<compile_context>
chip_gen: v7x
topology: tpu7x:2x2x1
jax: 0.10.0
libtpu: 0.0.40
codegen_flags: <defaults>
</compile_context>

<pallas_src>
import functools
import math

import jax
import jax.numpy as jnp
from jax import lax
from jax.experimental import pallas as pl
from jax.experimental.pallas import tpu as pltpu


def _pick_spatial_tile(nsp, cap=16384):
    """Largest multiple-of-128 divisor of nsp that is <= cap, else the full extent."""
    if nsp <= cap:
        return nsp
    best = None
    t = 128
    while t <= cap:
        if nsp % t == 0:
            best = t
        t += 128
    return best if best is not None else nsp


def _bce_logits(z, y):
    # == F.binary_cross_entropy(sigmoid(z), y), stable softplus form
    # (differs from torch only at the -100 log clamp, i.e. full saturation).
    return jnp.maximum(z, 0.0) - z * y + jnp.log(1.0 + jnp.exp(-jnp.abs(z)))


# --------------------------------------------------------------------------------------
# Fused dense kernel: decode + divide-free IoU ignore mask + objectness BCE.
# Grid = (B, nA, spatial_tiles); per-(b, a) partial loss written to its own block.
# --------------------------------------------------------------------------------------
def _yolov4_obj_kernel(hit_ref, x_ref, tru_ref, out_ref, acc_ref, *,
                       nW, s_tile, n_labels, n_anchors,
                       anchors_w, anchors_h, ignore_thre):
    b = pl.program_id(0)      # batch index        ("parallel")
    a = pl.program_id(1)      # anchor index       ("parallel")
    t = pl.program_id(2)      # spatial tile index ("arbitrary", innermost)
    n_t = pl.num_programs(2)

    @pl.when(t == 0)
    def _init():
        acc_ref[...] = jnp.zeros_like(acc_ref)

    x = x_ref[0, 0].astype(jnp.float32)       # (n_ch, s_tile) raw logits (lane-dense)
    tru = tru_ref[0]                          # (M, 8) f32: [x, y, w, h, valid, 0, 0, 0]

    # ---- anchor (w, h): compile-time constants selected by the runtime anchor id ----
    aw = jnp.float32(anchors_w[-1])
    ah = jnp.float32(anchors_h[-1])
    for k in range(len(anchors_w) - 1):
        aw = jnp.where(a == k, jnp.float32(anchors_w[k]), aw)
        ah = jnp.where(a == k, jnp.float32(anchors_h[k]), ah)

    # ---- grid coords generated in-kernel (no grid_x / grid_y HBM streams) ----
    ii_i = lax.broadcasted_iota(jnp.int32, (1, s_tile), 1) + t * s_tile
    ii = ii_i.astype(jnp.float32)
    gy = jnp.floor((ii + 0.5) / float(nW))
    gx = ii - gy * float(nW)

    # ---- box decode (registers/VMEM only; never written to HBM) ----
    px = jax.nn.sigmoid(x[0:1]) + gx          # (1, S)
    py = jax.nn.sigmoid(x[1:2]) + gy
    pw = jnp.exp(x[2:3]) * aw
    ph = jnp.exp(x[3:4]) * ah
    p_area = pw * ph
    px1 = px - pw * 0.5
    px2 = px + pw * 0.5
    py1 = py - ph * 0.5
    py2 = py + ph * 0.5

    # ---- ignore test vs every valid truth: compare form, NO divide, chunked over M ----
    thre = jnp.float32(ignore_thre)
    hit_ignore = jnp.zeros((1, s_tile), jnp.float32)
    for m0 in range(0, n_labels, 8):
        cc = min(8, n_labels - m0)
        tx = tru[m0:m0 + cc, 0:1]             # (cc, 1) -> broadcast over lanes
        ty = tru[m0:m0 + cc, 1:2]
        tw = tru[m0:m0 + cc, 2:3]
        th = tru[m0:m0 + cc, 3:4]
        vl = tru[m0:m0 + cc, 4:5]
        dx = jnp.minimum(px2, tx + tw * 0.5) - jnp.maximum(px1, tx - tw * 0.5)
        dy = jnp.minimum(py2, ty + th * 0.5) - jnp.maximum(py1, ty - th * 0.5)
        inter = jnp.maximum(dx, 0.0) * jnp.maximum(dy, 0.0)          # (cc, S)
        union = p_area + tw * th - inter
        # iou > thre  <=>  inter > thre * union   (union > 0 since pw*ph > 0)
        hm = jnp.where((inter > thre * union) & (vl > 0.5), 1.0, 0.0)
        hit_ignore = jnp.maximum(hit_ignore, jnp.max(hm, axis=0, keepdims=True))

    # ---- label obj-target cells rebuilt from the tiny SMEM table (M compares) ----
    base = (b * n_anchors + a) * n_labels
    hit_lab = jnp.zeros((1, s_tile), jnp.float32)
    for m in range(n_labels):
        idx = hit_ref[base + m]               # int32 scalar from SMEM (-1 = no hit)
        hit_lab = jnp.maximum(hit_lab, jnp.where(ii_i == idx, 1.0, 0.0))

    # obj_mask = (best_iou <= thre), forced to 1 at label cells; target = 1 at label cells
    obj_mask = jnp.maximum(1.0 - hit_ignore, hit_lab)
    z_obj = x[4:5]
    acc_ref[...] += obj_mask * _bce_logits(z_obj, hit_lab)           # pure VPU adds

    # ---- ONE cross-lane reduce per (b, a), on the last spatial tile ----
    @pl.when(t == n_t - 1)
    def _finish():
        total = jnp.sum(acc_ref[...])
        r = lax.broadcasted_iota(jnp.int32, (8, 128), 0)
        cix = lax.broadcasted_iota(jnp.int32, (8, 128), 1)
        out_ref[0, 0] = jnp.where((r == 0) & (cix == 0), total, 0.0)


# --------------------------------------------------------------------------------------
# Wrapper: O(B*M) per-label glue (anchor match, sparse xy/wh/cls losses) + pallas_call.
# --------------------------------------------------------------------------------------
def yolov4_loss(output, labels, *, num_classes=2, num_anchors=3,
                anchors=(0.68, 1.38, 0.97, 1.87, 1.03, 2.65),
                anchor_mask=(0, 1, 2), ignore_thre=0.5):
    f32 = jnp.float32
    B, C, nH, nW = output.shape
    nA, nC = num_anchors, num_classes
    n_ch = 5 + nC
    assert C == nA * n_ch
    M = labels.shape[1]
    nSp = nH * nW

    aw_t = tuple(float(anchors[2 * k]) for k in range(nA))
    ah_t = tuple(float(anchors[2 * k + 1]) for k in range(nA))
    aw_arr = jnp.asarray(aw_t, f32)
    ah_arr = jnp.asarray(ah_t, f32)

    # Native-dtype, lane-dense channel-major view: pure reshape, no transpose, no upcast.
    logits = output.reshape(B, nA, n_ch, nSp)

    labels = labels.astype(f32)
    nlabel = jnp.sum(jnp.sum(labels, axis=2) > 0, axis=1)             # (B,)
    valid = jnp.arange(M)[None, :] < nlabel[:, None]                  # (B, M)
    tx = labels[:, :, 1] * nW
    ty = labels[:, :, 2] * nH
    tw = labels[:, :, 3] * nW
    th = labels[:, :, 4] * nH
    i_idx = tx.astype(jnp.int32)                                      # truncation (>=0)
    j_idx = ty.astype(jnp.int32)
    s_flat = jnp.clip(j_idx * nW + i_idx, 0, nSp - 1)                 # (B, M)

    # ---- anchor matching: full CIOU of corner boxes [0,0,w,h] vs [0,0,aw,ah] ----
    w1 = jnp.where(valid, tw, 1.0)[..., None]                         # (B, M, 1)
    h1 = jnp.where(valid, th, 1.0)[..., None]
    w2 = aw_arr[None, None, :]                                        # (1, 1, nA)
    h2 = ah_arr[None, None, :]
    min_w = jnp.minimum(w1, w2)
    min_h = jnp.minimum(h1, h2)
    en = ((min_w > 0) & (min_h > 0)).astype(f32)
    area_i = min_w * min_h * en
    area_u = w1 * h1 + w2 * h2 - area_i
    iou_a = area_i / area_u
    rho2 = 0.25 * ((w1 - w2) ** 2 + (h1 - h2) ** 2)
    c2 = jnp.maximum(w1, w2) ** 2 + jnp.maximum(h1, h2) ** 2 + 1e-16
    v = (4.0 / math.pi ** 2) * (jnp.arctan(w1 / h1) - jnp.arctan(w2 / h2)) ** 2
    alpha = v / (1.0 - iou_a + v)
    ciou = iou_a - (rho2 / c2 + v * alpha)
    best_n_all = jnp.argmax(ciou, axis=-1)                            # (B, M)
    best_n = best_n_all % 3
    am = jnp.asarray(anchor_mask, jnp.int32)
    best_n_mask = jnp.any(best_n_all[..., None] == am[None, None, :], axis=-1)
    do_write = valid & best_n_mask
    has_any = jnp.any(do_write, axis=1)                               # (B,)

    # ---- last-write-wins dedup for duplicate (anchor, cell) label assignments ----
    # TODO(synk): argmax tie-breaking for the best anchor may still differ from torch.
    cell_key = best_n * nSp + s_flat
    same = cell_key[:, :, None] == cell_key[:, None, :]
    later = jnp.arange(M)[None, None, :] > jnp.arange(M)[None, :, None]
    overwritten = jnp.any(same & later & do_write[:, None, :], axis=-1)
    keep = (do_write & ~overwritten).astype(f32)                      # (B, M)

    # ---- sparse losses (xy / wh / cls) from logits gathered at the label cells ----
    b_idx = jnp.broadcast_to(jnp.arange(B)[:, None], (B, M))
    z_lab = logits[b_idx, best_n, :, s_flat].astype(f32)              # (B, M, n_ch)
    fx = tx - i_idx.astype(f32)
    fy = ty - j_idx.astype(f32)
    aw_sel = aw_arr[best_n]
    ah_sel = ah_arr[best_n]
    lw = jnp.log(tw / aw_sel + 1e-16)
    lh = jnp.log(th / ah_sel + 1e-16)
    sc2 = 2.0 - tw * th / float(nW * nH)                              # tgt_scale ** 2
    cls_oh = jax.nn.one_hot(labels[:, :, 0].astype(jnp.int32), nC, dtype=f32)

    l_xy = jnp.sum(keep * sc2 * (_bce_logits(z_lab[..., 0], fx) +
                                 _bce_logits(z_lab[..., 1], fy)))
    l_wh = 0.5 * jnp.sum(keep * sc2 * ((z_lab[..., 2] - lw) ** 2 +
                                       (z_lab[..., 3] - lh) ** 2))
    l_cls = jnp.sum(keep[..., None] * _bce_logits(z_lab[..., 5:], cls_oh))

    # ---- tiny tables consumed by the dense obj/ignore kernel ----
    # valid_eff folds in the "batch skipped -> obj_mask stays all ones" rule.
    valid_eff = (valid & has_any[:, None]).astype(f32)
    zeros_bm = jnp.zeros((B, M), f32)
    truth = jnp.stack([tx, ty, tw, th, valid_eff,
                       zeros_bm, zeros_bm, zeros_bm], axis=-1)        # (B, M, 8)

    hit_idx = jnp.where(
        do_write[:, None, :] & (best_n[:, None, :] == jnp.arange(nA)[None, :, None]),
        s_flat[:, None, :], -1).astype(jnp.int32).reshape(-1)         # (B*nA*M,) SMEM

    # ---- fused dense pass ----
    s_tile = _pick_spatial_tile(nSp)
    n_tiles = nSp // s_tile
    grid = (B, nA, n_tiles)

    kernel = functools.partial(
        _yolov4_obj_kernel, nW=nW, s_tile=s_tile, n_labels=M, n_anchors=nA,
        anchors_w=aw_t, anchors_h=ah_t, ignore_thre=float(ignore_thre))

    obj_part = pl.pallas_call(
        kernel,
        out_shape=jax.ShapeDtypeStruct((B, nA, 8, 128), f32),
        grid_spec=pltpu.PrefetchScalarGridSpec(
            num_scalar_prefetch=1,
            grid=grid,
            in_specs=[
                pl.BlockSpec((1, 1, n_ch, s_tile), lambda b, a, t, hit: (b, a, 0, t)),
                pl.BlockSpec((1, M, 8), lambda b, a, t, hit: (b, 0, 0)),
            ],
            out_specs=pl.BlockSpec((1, 1, 8, 128), lambda b, a, t, hit: (b, a, 0, 0)),
            scratch_shapes=[pltpu.VMEM((1, s_tile), f32)],
        ),
        compiler_params=pltpu.CompilerParams(
            # b / anchor axes are independent (distinct output blocks) -> megacore-safe;
            # the spatial reduction axis stays "arbitrary" (resident accumulator).
            dimension_semantics=("parallel", "parallel", "arbitrary")),
    )(hit_idx, logits, truth)

    l_obj = jnp.sum(obj_part)
    return (l_xy + l_wh + l_obj + l_cls) / B


# --------------------------------------------------------------------------------------
if __name__ == "__main__":
    key = jax.random.PRNGKey(0)
    B, nA, nC = 2, 3, 2
    nH = nW = 16                      # square grid (the reference assumes nH == nW)
    n_ch = 5 + nC
    M = 8                             # max labels per image

    k1, k2, k3, k4 = jax.random.split(key, 4)
    # network output (NCHW) — the tensor Yolov4Loss.forward receives
    output = 0.5 * jax.random.normal(k1, (B, nA * n_ch, nH, nW), dtype=jnp.float32)

    # labels: (B, M, 5) = [class, x, y, w, h] (normalized), valid rows first, rest zero
    n_valid = jnp.array([3, 2])
    cls = jax.random.randint(k2, (B, M), 0, nC).astype(jnp.float32)
    xy = jax.random.uniform(k3, (B, M, 2), minval=0.1, maxval=0.9)
    wh = jax.random.uniform(k4, (B, M, 2), minval=0.05, maxval=0.3)
    lab = jnp.concatenate([cls[..., None], xy, wh], axis=-1)
    row_valid = (jnp.arange(M)[None, :] < n_valid[:, None]).astype(jnp.float32)
    labels = lab * row_valid[..., None]

    loss = jax.jit(yolov4_loss)(output, labels)
    jax.block_until_ready(loss)
    assert jnp.isfinite(loss), f"loss is not finite: {loss}"
    print("KERNEL_OK")
</pallas_src>

<mosaic_0001>
module attributes {stable_mosaic.version = 11 : i64} {
  func.func @_yolov4_obj_kernel(%arg0: i32, %arg1: i32, %arg2: i32, %arg3: memref<48xi32, #tpu.memory_space<smem>>, %arg4: memref<1x1x7x256xf32, #tpu.memory_space<vmem>>, %arg5: memref<1x8x8xf32, #tpu.memory_space<vmem>>, %arg6: memref<1x1x8x128xf32, #tpu.memory_space<vmem>>, %arg7: memref<1x256xf32, #tpu.memory_space<vmem>>) attributes {dimension_semantics = [#tpu.dimension_semantics<parallel>, #tpu.dimension_semantics<parallel>, #tpu.dimension_semantics<arbitrary>], iteration_bounds = array<i64: 2, 3, 1>, scalar_prefetch = 1 : i64, scratch_operands = 1 : i64, tpu.core_type = #tpu.core_type<tc>, window_params = [{transform_indices = @transform_0, window_bounds = array<i64: 1, 1, 7, 256>}, {transform_indices = @transform_1, window_bounds = array<i64: 1, 8, 8>}, {transform_indices = @transform_2, window_bounds = array<i64: 1, 1, 8, 128>}]} {
    %c0_i32 = arith.constant 0 : i32
    %0 = arith.cmpi eq, %arg2, %c0_i32 : i32
    %1 = arith.extui %0 : i1 to i32
    %c0_i32_0 = arith.constant 0 : i32
    %2 = arith.cmpi ne, %1, %c0_i32_0 : i32
    scf.if %2 {
      %cst_66 = arith.constant 0.000000e+00 : f32
      %217 = vector.broadcast %cst_66 : f32 to vector<1x256xf32>
      %c0_67 = arith.constant 0 : index
      %c0_68 = arith.constant 0 : index
      %218 = vector.load %arg7[%c0_67, %c0_68] : memref<1x256xf32, #tpu.memory_space<vmem>>, vector<1x256xf32>
      tpu.vector_store %arg7[%c0_67, %c0_68], %217 {strides = array<i32>} : memref<1x256xf32, #tpu.memory_space<vmem>>, vector<1x256xf32>,
    } else {
    }
    %c0 = arith.constant 0 : index
    %c0_1 = arith.constant 0 : index
    %c0_2 = arith.constant 0 : index
    %c0_3 = arith.constant 0 : index
    %3 = vector.load %arg4[%c0, %c0_1, %c0_2, %c0_3] : memref<1x1x7x256xf32, #tpu.memory_space<vmem>>, vector<1x1x7x256xf32>
    %4 = vector.shape_cast %3 : vector<1x1x7x256xf32> to vector<7x256xf32>
    %c0_4 = arith.constant 0 : index
    %c0_5 = arith.constant 0 : index
    %c0_6 = arith.constant 0 : index
    %5 = vector.load %arg5[%c0_4, %c0_5, %c0_6] : memref<1x8x8xf32, #tpu.memory_space<vmem>>, vector<1x8x8xf32>
    %6 = vector.shape_cast %5 : vector<1x8x8xf32> to vector<8x8xf32>
    %c0_i32_7 = arith.constant 0 : i32
    %7 = arith.cmpi eq, %arg1, %c0_i32_7 : i32
    %cst = arith.constant 6.800000e-01 : f32
    %cst_8 = arith.constant 1.030000e+00 : f32
    %8 = arith.select %7, %cst, %cst_8 : f32
    %c0_i32_9 = arith.constant 0 : i32
    %9 = arith.cmpi eq, %arg1, %c0_i32_9 : i32
    %cst_10 = arith.constant 1.380000e+00 : f32
    %cst_11 = arith.constant 2.650000e+00 : f32
    %10 = arith.select %9, %cst_10, %cst_11 : f32
    %c1_i32 = arith.constant 1 : i32
    %11 = arith.cmpi eq, %arg1, %c1_i32 : i32
    %cst_12 = arith.constant 9.700000e-01 : f32
    %12 = arith.select %11, %cst_12, %8 : f32
    %c1_i32_13 = arith.constant 1 : i32
    %13 = arith.cmpi eq, %arg1, %c1_i32_13 : i32
    %cst_14 = arith.constant 1.870000e+00 : f32
    %14 = arith.select %13, %cst_14, %10 : f32
    %15 = tpu.iota {dimensions = array<i32: 1>} : vector<1x256xi32>
    %c256_i32 = arith.constant 256 : i32
    %16 = arith.muli %arg2, %c256_i32 : i32
    %17 = vector.broadcast %16 : i32 to vector<1x256xi32>
    %18 = arith.addi %15, %17 : vector<1x256xi32>
    %19 = arith.sitofp %18 : vector<1x256xi32> to vector<1x256xf32>
    %cst_15 = arith.constant 5.000000e-01 : f32
    %20 = vector.broadcast %cst_15 : f32 to vector<1x256xf32>
    %21 = arith.addf %19, %20 : vector<1x256xf32>
    %cst_16 = arith.constant 1.600000e+01 : f32
    %22 = vector.broadcast %cst_16 : f32 to vector<1x256xf32>
    %23 = arith.divf %21, %22 : vector<1x256xf32>
    %24 = math.floor %23 : vector<1x256xf32>
    %cst_17 = arith.constant 1.600000e+01 : f32
    %25 = vector.broadcast %cst_17 : f32 to vector<1x256xf32>
    %26 = arith.mulf %24, %25 : vector<1x256xf32>
    %27 = arith.subf %19, %26 : vector<1x256xf32>
    %28 = vector.extract_strided_slice %4 {offsets = [0, 0], sizes = [1, 256], strides = [1, 1]} : vector<7x256xf32> to vector<1x256xf32>
    %29 = arith.negf %28 : vector<1x256xf32>
    %30 = math.exp %29 : vector<1x256xf32>
    %cst_18 = arith.constant 1.000000e+00 : f32
    %31 = vector.broadcast %cst_18 : f32 to vector<1x256xf32>
    %32 = arith.addf %31, %30 : vector<1x256xf32>
    %33 = arith.divf %31, %32 : vector<1x256xf32>
    %34 = arith.addf %33, %27 : vector<1x256xf32>
    %35 = vector.extract_strided_slice %4 {offsets = [1, 0], sizes = [1, 256], strides = [1, 1]} : vector<7x256xf32> to vector<1x256xf32>
    %36 = arith.negf %35 : vector<1x256xf32>
    %37 = math.exp %36 : vector<1x256xf32>
    %cst_19 = arith.constant 1.000000e+00 : f32
    %38 = vector.broadcast %cst_19 : f32 to vector<1x256xf32>
    %39 = arith.addf %38, %37 : vector<1x256xf32>
    %40 = arith.divf %38, %39 : vector<1x256xf32>
    %41 = arith.addf %40, %24 : vector<1x256xf32>
    %42 = vector.extract_strided_slice %4 {offsets = [2, 0], sizes = [1, 256], strides = [1, 1]} : vector<7x256xf32> to vector<1x256xf32>
    %43 = math.exp %42 : vector<1x256xf32>
    %44 = vector.broadcast %12 : f32 to vector<1x256xf32>
    %45 = arith.mulf %43, %44 : vector<1x256xf32>
    %46 = vector.extract_strided_slice %4 {offsets = [3, 0], sizes = [1, 256], strides = [1, 1]} : vector<7x256xf32> to vector<1x256xf32>
    %47 = math.exp %46 : vector<1x256xf32>
    %48 = vector.broadcast %14 : f32 to vector<1x256xf32>
    %49 = arith.mulf %47, %48 : vector<1x256xf32>
    %50 = arith.mulf %45, %49 : vector<1x256xf32>
    %cst_20 = arith.constant 5.000000e-01 : f32
    %51 = vector.broadcast %cst_20 : f32 to vector<1x256xf32>
    %52 = arith.mulf %45, %51 : vector<1x256xf32>
    %53 = arith.subf %34, %52 : vector<1x256xf32>
    %cst_21 = arith.constant 5.000000e-01 : f32
    %54 = vector.broadcast %cst_21 : f32 to vector<1x256xf32>
    %55 = arith.mulf %45, %54 : vector<1x256xf32>
    %56 = arith.addf %34, %55 : vector<1x256xf32>
    %cst_22 = arith.constant 5.000000e-01 : f32
    %57 = vector.broadcast %cst_22 : f32 to vector<1x256xf32>
    %58 = arith.mulf %49, %57 : vector<1x256xf32>
    %59 = arith.subf %41, %58 : vector<1x256xf32>
    %cst_23 = arith.constant 5.000000e-01 : f32
    %60 = vector.broadcast %cst_23 : f32 to vector<1x256xf32>
    %61 = arith.mulf %49, %60 : vector<1x256xf32>
    %62 = arith.addf %41, %61 : vector<1x256xf32>
    %cst_24 = arith.constant 0.000000e+00 : f32
    %63 = vector.broadcast %cst_24 : f32 to vector<1x256xf32>
    %64 = vector.extract_strided_slice %6 {offsets = [0, 0], sizes = [8, 1], strides = [1, 1]} : vector<8x8xf32> to vector<8x1xf32>
    %65 = vector.extract_strided_slice %6 {offsets = [0, 1], sizes = [8, 1], strides = [1, 1]} : vector<8x8xf32> to vector<8x1xf32>
    %66 = vector.extract_strided_slice %6 {offsets = [0, 2], sizes = [8, 1], strides = [1, 1]} : vector<8x8xf32> to vector<8x1xf32>
    %67 = vector.extract_strided_slice %6 {offsets = [0, 3], sizes = [8, 1], strides = [1, 1]} : vector<8x8xf32> to vector<8x1xf32>
    %68 = vector.extract_strided_slice %6 {offsets = [0, 4], sizes = [8, 1], strides = [1, 1]} : vector<8x8xf32> to vector<8x1xf32>
    %cst_25 = arith.constant 5.000000e-01 : f32
    %69 = vector.broadcast %cst_25 : f32 to vector<8x1xf32>
    %70 = arith.mulf %66, %69 : vector<8x1xf32>
    %71 = arith.addf %64, %70 : vector<8x1xf32>
    %72 = vector.broadcast %56 : vector<1x256xf32> to vector<8x256xf32>
    %73 = vector.broadcast %71 : vector<8x1xf32> to vector<8x256xf32>
    %74 = arith.minimumf %72, %73 : vector<8x256xf32>
    %cst_26 = arith.constant 5.000000e-01 : f32
    %75 = vector.broadcast %cst_26 : f32 to vector<8x1xf32>
    %76 = arith.mulf %66, %75 : vector<8x1xf32>
    %77 = arith.subf %64, %76 : vector<8x1xf32>
    %78 = vector.broadcast %53 : vector<1x256xf32> to vector<8x256xf32>
    %79 = vector.broadcast %77 : vector<8x1xf32> to vector<8x256xf32>
    %80 = arith.maximumf %78, %79 : vector<8x256xf32>
    %81 = arith.subf %74, %80 : vector<8x256xf32>
    %cst_27 = arith.constant 5.000000e-01 : f32
    %82 = vector.broadcast %cst_27 : f32 to vector<8x1xf32>
    %83 = arith.mulf %67, %82 : vector<8x1xf32>
    %84 = arith.addf %65, %83 : vector<8x1xf32>
    %85 = vector.broadcast %62 : vector<1x256xf32> to vector<8x256xf32>
    %86 = vector.broadcast %84 : vector<8x1xf32> to vector<8x256xf32>
    %87 = arith.minimumf %85, %86 : vector<8x256xf32>
    %cst_28 = arith.constant 5.000000e-01 : f32
    %88 = vector.broadcast %cst_28 : f32 to vector<8x1xf32>
    %89 = arith.mulf %67, %88 : vector<8x1xf32>
    %90 = arith.subf %65, %89 : vector<8x1xf32>
    %91 = vector.broadcast %59 : vector<1x256xf32> to vector<8x256xf32>
    %92 = vector.broadcast %90 : vector<8x1xf32> to vector<8x256xf32>
    %93 = arith.maximumf %91, %92 : vector<8x256xf32>
    %94 = arith.subf %87, %93 : vector<8x256xf32>
    %cst_29 = arith.constant 0.000000e+00 : f32
    %95 = vector.broadcast %cst_29 : f32 to vector<8x256xf32>
    %96 = arith.maximumf %81, %95 : vector<8x256xf32>
    %cst_30 = arith.constant 0.000000e+00 : f32
    %97 = vector.broadcast %cst_30 : f32 to vector<8x256xf32>
    %98 = arith.maximumf %94, %97 : vector<8x256xf32>
    %99 = arith.mulf %96, %98 : vector<8x256xf32>
    %100 = arith.mulf %66, %67 : vector<8x1xf32>
    %101 = vector.broadcast %50 : vector<1x256xf32> to vector<8x256xf32>
    %102 = vector.broadcast %100 : vector<8x1xf32> to vector<8x256xf32>
    %103 = arith.addf %101, %102 : vector<8x256xf32>
    %104 = arith.subf %103, %99 : vector<8x256xf32>
    %cst_31 = arith.constant 5.000000e-01 : f32
    %105 = vector.broadcast %cst_31 : f32 to vector<8x256xf32>
    %106 = arith.mulf %105, %104 : vector<8x256xf32>
    %107 = arith.cmpf ogt, %99, %106 : vector<8x256xf32>
    %cst_32 = arith.constant 5.000000e-01 : f32
    %108 = vector.broadcast %cst_32 : f32 to vector<8x1xf32>
    %109 = arith.cmpf ogt, %68, %108 : vector<8x1xf32>
    %110 = vector.broadcast %109 : vector<8x1xi1> to vector<8x256xi1>
    %111 = arith.andi %107, %110 : vector<8x256xi1>
    %cst_33 = arith.constant 1.000000e+00 : f32
    %cst_34 = arith.constant 0.000000e+00 : f32
    %112 = vector.broadcast %cst_33 : f32 to vector<8x256xf32>
    %113 = vector.broadcast %cst_34 : f32 to vector<8x256xf32>
    %114 = arith.select %111, %112, %113 : vector<8x256xi1>, vector<8x256xf32>
    %cst_35 = arith.constant dense<0xFF800000> : vector<256xf32>
    %115 = vector.multi_reduction <maximumf>, %114, %cst_35 [0] : vector<8x256xf32> to vector<256xf32>
    %116 = vector.shape_cast %115 : vector<256xf32> to vector<1x256xf32>
    %117 = arith.maximumf %63, %116 : vector<1x256xf32>
    %c3_i32 = arith.constant 3 : i32
    %118 = arith.muli %arg0, %c3_i32 : i32
    %119 = arith.addi %118, %arg1 : i32
    %c8_i32 = arith.constant 8 : i32
    %120 = arith.muli %119, %c8_i32 : i32
    %cst_36 = arith.constant 0.000000e+00 : f32
    %121 = vector.broadcast %cst_36 : f32 to vector<1x256xf32>
    %c0_i32_37 = arith.constant 0 : i32
    %122 = arith.addi %120, %c0_i32_37 : i32
    %123 = arith.index_cast %122 : i32 to index
    %124 = memref.load %arg3[%123] : memref<48xi32, #tpu.memory_space<smem>>
    %125 = vector.broadcast %124 : i32 to vector<1x256xi32>
    %126 = arith.cmpi eq, %18, %125 : vector<1x256xi32>
    %cst_38 = arith.constant 1.000000e+00 : f32
    %cst_39 = arith.constant 0.000000e+00 : f32
    %127 = vector.broadcast %cst_38 : f32 to vector<1x256xf32>
    %128 = vector.broadcast %cst_39 : f32 to vector<1x256xf32>
    %129 = arith.select %126, %127, %128 : vector<1x256xi1>, vector<1x256xf32>
    %130 = arith.maximumf %121, %129 : vector<1x256xf32>
    %c1_i32_40 = arith.constant 1 : i32
    %131 = arith.addi %120, %c1_i32_40 : i32
    %132 = arith.index_cast %131 : i32 to index
    %133 = memref.load %arg3[%132] : memref<48xi32, #tpu.memory_space<smem>>
    %134 = vector.broadcast %133 : i32 to vector<1x256xi32>
    %135 = arith.cmpi eq, %18, %134 : vector<1x256xi32>
    %cst_41 = arith.constant 1.000000e+00 : f32
    %cst_42 = arith.constant 0.000000e+00 : f32
    %136 = vector.broadcast %cst_41 : f32 to vector<1x256xf32>
    %137 = vector.broadcast %cst_42 : f32 to vector<1x256xf32>
    %138 = arith.select %135, %136, %137 : vector<1x256xi1>, vector<1x256xf32>
    %139 = arith.maximumf %130, %138 : vector<1x256xf32>
    %c2_i32 = arith.constant 2 : i32
    %140 = arith.addi %120, %c2_i32 : i32
    %141 = arith.index_cast %140 : i32 to index
    %142 = memref.load %arg3[%141] : memref<48xi32, #tpu.memory_space<smem>>
    %143 = vector.broadcast %142 : i32 to vector<1x256xi32>
    %144 = arith.cmpi eq, %18, %143 : vector<1x256xi32>
    %cst_43 = arith.constant 1.000000e+00 : f32
    %cst_44 = arith.constant 0.000000e+00 : f32
    %145 = vector.broadcast %cst_43 : f32 to vector<1x256xf32>
    %146 = vector.broadcast %cst_44 : f32 to vector<1x256xf32>
    %147 = arith.select %144, %145, %146 : vector<1x256xi1>, vector<1x256xf32>
    %148 = arith.maximumf %139, %147 : vector<1x256xf32>
    %c3_i32_45 = arith.constant 3 : i32
    %149 = arith.addi %120, %c3_i32_45 : i32
    %150 = arith.index_cast %149 : i32 to index
    %151 = memref.load %arg3[%150] : memref<48xi32, #tpu.memory_space<smem>>
    %152 = vector.broadcast %151 : i32 to vector<1x256xi32>
    %153 = arith.cmpi eq, %18, %152 : vector<1x256xi32>
    %cst_46 = arith.constant 1.000000e+00 : f32
    %cst_47 = arith.constant 0.000000e+00 : f32
    %154 = vector.broadcast %cst_46 : f32 to vector<1x256xf32>
    %155 = vector.broadcast %cst_47 : f32 to vector<1x256xf32>
    %156 = arith.select %153, %154, %155 : vector<1x256xi1>, vector<1x256xf32>
    %157 = arith.maximumf %148, %156 : vector<1x256xf32>
    %c4_i32 = arith.constant 4 : i32
    %158 = arith.addi %120, %c4_i32 : i32
    %159 = arith.index_cast %158 : i32 to index
    %160 = memref.load %arg3[%159] : memref<48xi32, #tpu.memory_space<smem>>
    %161 = vector.broadcast %160 : i32 to vector<1x256xi32>
    %162 = arith.cmpi eq, %18, %161 : vector<1x256xi32>
    %cst_48 = arith.constant 1.000000e+00 : f32
    %cst_49 = arith.constant 0.000000e+00 : f32
    %163 = vector.broadcast %cst_48 : f32 to vector<1x256xf32>
    %164 = vector.broadcast %cst_49 : f32 to vector<1x256xf32>
    %165 = arith.select %162, %163, %164 : vector<1x256xi1>, vector<1x256xf32>
    %166 = arith.maximumf %157, %165 : vector<1x256xf32>
    %c5_i32 = arith.constant 5 : i32
    %167 = arith.addi %120, %c5_i32 : i32
    %168 = arith.index_cast %167 : i32 to index
    %169 = memref.load %arg3[%168] : memref<48xi32, #tpu.memory_space<smem>>
    %170 = vector.broadcast %169 : i32 to vector<1x256xi32>
    %171 = arith.cmpi eq, %18, %170 : vector<1x256xi32>
    %cst_50 = arith.constant 1.000000e+00 : f32
    %cst_51 = arith.constant 0.000000e+00 : f32
    %172 = vector.broadcast %cst_50 : f32 to vector<1x256xf32>
    %173 = vector.broadcast %cst_51 : f32 to vector<1x256xf32>
    %174 = arith.select %171, %172, %173 : vector<1x256xi1>, vector<1x256xf32>
    %175 = arith.maximumf %166, %174 : vector<1x256xf32>
    %c6_i32 = arith.constant 6 : i32
    %176 = arith.addi %120, %c6_i32 : i32
    %177 = arith.index_cast %176 : i32 to index
    %178 = memref.load %arg3[%177] : memref<48xi32, #tpu.memory_space<smem>>
    %179 = vector.broadcast %178 : i32 to vector<1x256xi32>
    %180 = arith.cmpi eq, %18, %179 : vector<1x256xi32>
    %cst_52 = arith.constant 1.000000e+00 : f32
    %cst_53 = arith.constant 0.000000e+00 : f32
    %181 = vector.broadcast %cst_52 : f32 to vector<1x256xf32>
    %182 = vector.broadcast %cst_53 : f32 to vector<1x256xf32>
    %183 = arith.select %180, %181, %182 : vector<1x256xi1>, vector<1x256xf32>
    %184 = arith.maximumf %175, %183 : vector<1x256xf32>
    %c7_i32 = arith.constant 7 : i32
    %185 = arith.addi %120, %c7_i32 : i32
    %186 = arith.index_cast %185 : i32 to index
    %187 = memref.load %arg3[%186] : memref<48xi32, #tpu.memory_space<smem>>
    %188 = vector.broadcast %187 : i32 to vector<1x256xi32>
    %189 = arith.cmpi eq, %18, %188 : vector<1x256xi32>
    %cst_54 = arith.constant 1.000000e+00 : f32
    %cst_55 = arith.constant 0.000000e+00 : f32
    %190 = vector.broadcast %cst_54 : f32 to vector<1x256xf32>
    %191 = vector.broadcast %cst_55 : f32 to vector<1x256xf32>
    %192 = arith.select %189, %190, %191 : vector<1x256xi1>, vector<1x256xf32>
    %193 = arith.maximumf %184, %192 : vector<1x256xf32>
    %cst_56 = arith.constant 1.000000e+00 : f32
    %194 = vector.broadcast %cst_56 : f32 to vector<1x256xf32>
    %195 = arith.subf %194, %117 : vector<1x256xf32>
    %196 = arith.maximumf %195, %193 : vector<1x256xf32>
    %197 = vector.extract_strided_slice %4 {offsets = [4, 0], sizes = [1, 256], strides = [1, 1]} : vector<7x256xf32> to vector<1x256xf32>
    %c0_57 = arith.constant 0 : index
    %c0_58 = arith.constant 0 : index
    %198 = vector.load %arg7[%c0_57, %c0_58] : memref<1x256xf32, #tpu.memory_space<vmem>>, vector<1x256xf32>
    %cst_59 = arith.constant 0.000000e+00 : f32
    %199 = vector.broadcast %cst_59 : f32 to vector<1x256xf32>
    %200 = arith.maximumf %197, %199 : vector<1x256xf32>
    %201 = arith.mulf %197, %193 : vector<1x256xf32>
    %202 = arith.subf %200, %201 : vector<1x256xf32>
    %203 = math.absf %197 : vector<1x256xf32>
    %cst_60 = arith.constant 0.000000e+00 : f32
    %204 = vector.broadcast %cst_60 : f32 to vector<1x256xf32>
    %205 = arith.subf %204, %203 : vector<1x256xf32>
    %206 = math.exp %205 : vector<1x256xf32>
    %cst_61 = arith.constant 1.000000e+00 : f32
    %207 = vector.broadcast %cst_61 : f32 to vector<1x256xf32>
    %208 = arith.addf %207, %206 : vector<1x256xf32>
    %209 = math.log %208 : vector<1x256xf32>
    %210 = arith.addf %202, %209 : vector<1x256xf32>
    %211 = arith.mulf %196, %210 : vector<1x256xf32>
    %212 = arith.addf %198, %211 : vector<1x256xf32>
    %c0_62 = arith.constant 0 : index
    %c0_63 = arith.constant 0 : index
    %213 = vector.load %arg7[%c0_62, %c0_63] : memref<1x256xf32, #tpu.memory_space<vmem>>, vector<1x256xf32>
    tpu.vector_store %arg7[%c0_62, %c0_63], %212 {strides = array<i32>} : memref<1x256xf32, #tpu.memory_space<vmem>>, vector<1x256xf32>,
    %c0_i32_64 = arith.constant 0 : i32
    %214 = arith.cmpi eq, %arg2, %c0_i32_64 : i32
    %215 = arith.extui %214 : i1 to i32
    %c0_i32_65 = arith.constant 0 : i32
    %216 = arith.cmpi ne, %215, %c0_i32_65 : i32
    scf.if %216 {
      %c0_66 = arith.constant 0 : index
      %c0_67 = arith.constant 0 : index
      %217 = vector.load %arg7[%c0_66, %c0_67] : memref<1x256xf32, #tpu.memory_space<vmem>>, vector<1x256xf32>
      %218 = vector.shape_cast %217 : vector<1x256xf32> to vector<1x1x256xf32>
      %cst_68 = arith.constant dense<0.000000e+00> : vector<1xf32>
      %219 = vector.multi_reduction <add>, %218, %cst_68 [1, 2] : vector<1x1x256xf32> to vector<1xf32>
      %220 = vector.shape_cast %219 : vector<1xf32> to vector<1x1x1xf32>
      %221 = vector.extract %220[0, 0, 0] : f32 from vector<1x1x1xf32>
      %222 = tpu.iota {dimensions = array<i32: 0>} : vector<8x128xi32>
      %223 = tpu.iota {dimensions = array<i32: 1>} : vector<8x128xi32>
      %c0_i32_69 = arith.constant 0 : i32
      %224 = vector.broadcast %c0_i32_69 : i32 to vector<8x128xi32>
      %225 = arith.cmpi eq, %222, %224 : vector<8x128xi32>
      %c0_i32_70 = arith.constant 0 : i32
      %226 = vector.broadcast %c0_i32_70 : i32 to vector<8x128xi32>
      %227 = arith.cmpi eq, %223, %226 : vector<8x128xi32>
      %228 = arith.andi %225, %227 : vector<8x128xi1>
      %cst_71 = arith.constant 0.000000e+00 : f32
      %229 = vector.broadcast %221 : f32 to vector<8x128xf32>
      %230 = vector.broadcast %cst_71 : f32 to vector<8x128xf32>
      %231 = arith.select %228, %229, %230 : vector<8x128xi1>, vector<8x128xf32>
      %c0_72 = arith.constant 0 : index
      %c0_73 = arith.constant 0 : index
      %c0_74 = arith.constant 0 : index
      %c0_75 = arith.constant 0 : index
      %232 = vector.load %arg6[%c0_72, %c0_73, %c0_74, %c0_75] : memref<1x1x8x128xf32, #tpu.memory_space<vmem>>, vector<1x1x8x128xf32>
      %233 = vector.shape_cast %232 : vector<1x1x8x128xf32> to vector<8x128xf32>
      %234 = vector.shape_cast %231 : vector<8x128xf32> to vector<1x1x8x128xf32>
      tpu.vector_store %arg6[%c0_72, %c0_73, %c0_74, %c0_75], %234 {strides = array<i32>} : memref<1x1x8x128xf32, #tpu.memory_space<vmem>>, vector<1x1x8x128xf32>,
    } else {
    }
    return
  }
  func.func @transform_0(%arg0: i32, %arg1: i32, %arg2: i32, %arg3: memref<48xi32, #tpu.memory_space<smem>>) -> (i32, i32, i32, i32) {
    %c0_i32 = arith.constant 0 : i32
    %c0_i32_0 = arith.constant 0 : i32
    return %arg0, %arg1, %c0_i32, %arg2 : i32, i32, i32, i32
  }
  func.func @transform_1(%arg0: i32, %arg1: i32, %arg2: i32, %arg3: memref<48xi32, #tpu.memory_space<smem>>) -> (i32, i32, i32) {
    %c0_i32 = arith.constant 0 : i32
    %c0_i32_0 = arith.constant 0 : i32
    %c0_i32_1 = arith.constant 0 : i32
    return %arg0, %c0_i32, %c0_i32_0 : i32, i32, i32
  }
  func.func @transform_2(%arg0: i32, %arg1: i32, %arg2: i32, %arg3: memref<48xi32, #tpu.memory_space<smem>>) -> (i32, i32, i32, i32) {
    %c0_i32 = arith.constant 0 : i32
    %c0_i32_0 = arith.constant 0 : i32
    %c0_i32_1 = arith.constant 0 : i32
    return %arg0, %arg1, %c0_i32, %c0_i32_0 : i32, i32, i32, i32
  }
}

</mosaic_0001>

<bundles_post_ra>
// kernel: yolov4_loss.1
= control target key start
LH: loop header
LB: loop body
LE: loop exit
PB: predicated region body
PF: predicated region fallthrough
CT: control target
= control target key end

     0   :  { %s1138_s0 = inlined_call_operand.vmem [shape: s32[48], index: 0, kind: input, shape index: {}]   ;;  %s1139_s1 = inlined_call_operand.vmem [shape: f32[2,3,7,256], index: 1, kind: input, shape index: {}]   ;;  %s1140_s2 = inlined_call_operand.vmem [shape: f32[2,8,8], index: 2, kind: input, shape index: {}]   ;;  %s1141_s3 = inlined_call_operand.vmem [shape: f32[2,3,8,128], index: 3, kind: output, shape index: {}]  }
   0x1   :  { %s8_s14 = sshll.u32 %s1138_s0, 4  ;;  %s9_s14 = int_to_ptr.vmem [resolvable:$true] %s8_s14 }
   0x2   :  { %s808_s15 = scalar_lea.vmem %s9_s14, 16  ;;  %p813_p1 = scmp.lt.s32.totalorder %s9_s14, %s9_s14 }
   0x3   :  { %p809_p0 = scmp.ne.s32.totalorder %s9_s14, %s808_s15  ;;  %p814_p2 = scmp.lt.s32.totalorder %s808_s15, %s808_s15 }
   0x5   :  { %p815_p3 = por %p814_p2, %p813_p1 }
   0x7   :  { %p816_p4 = pnand %p815_p3, %p809_p0 }
   0x9   :  { %819 = shalt.err (!%p816_p4)  }
   0xa   :  { %s862_s16 = smov [#allocation4]  }
   0xb   :  { %11 = dma.vmem_to_smem %s9_s14, 16, %s862_s16, [#allocation3] }
   0xc   :  { %840 = dma.done.wait [#allocation3], 16 }
   0xd   :  { %841 = vsyncadd [#allocation3], 4294967280 }
   0xe   :  { %13 = sfence }
   0xf   :  { %s894_s17 = smov 0   ;;  %s896_s18 = smov 0  }
  0x10   :  { %s898_s19 = smov 0   ;;  %s900_s0 = smov 0  }
  0x11   :  { %s902_s20 = smov 0  }
  0x12 LB: > { %s34_s21 = sadd.s32 1, %s852_s19  ;;  %s38_s22 = sadd.s32 1, %s856_s0  ;;  %s860_s20 = sphi %s902_s20, %s19_s20   ;;  %s856_s0 = sphi %s900_s0, %s1155_s0   ;;  %s852_s19 = sphi %s898_s19, %s1154_s19   ;;  %s848_s18 = sphi %s896_s18, %s1153_s18   ;;  %s844_s17 = sphi %s894_s17, %s1152_s17  }
  0x13   : > { %p36_p5 = scmp.ge.s32.totalorder %s34_s21, 3  ;;  %p720_p6 = scmp.ge.s32.totalorder %s860_s20, 1 }
  0x14   : > { %p162_p7 = scmp.lt.s32.totalorder %s860_s20, 7 }
  0x15   : > { %s1157_s21 = smov (%p36_p5, %s34_s21), 0  ;;  %s1159_s22 = smov (!%p36_p5, %s38_s22), %s856_s0 }
  0x16   : > { %p163_p8 = pnand %p720_p6, %p162_p7  ;;  %p40_p9 = scmp.ge.s32.totalorder %s1159_s22, 2 }
  0x17   : > { %p200_p10 = scmp.lt.s32.totalorder (!%p163_p8), %s848_s18, 1  ;;  %v863_v0 = vmov (!%p163_p8), 1   ;;  %v864_v1 = vmov (!%p163_p8), 0   ;;  %s865_s28 = smov (!%p163_p8), 126   ;;  %v867_v8 = vmov (!%p163_p8), 4   ;;  %v868_v11 = vmov (!%p163_p8), 2  }
  0x18   : > { %s1161_s22 = smov (%p40_p9, %s1159_s22), 0  ;;  %166 = sbr.rel (%p163_p8) target bundleno = 556 (0x22c), region = 28 }
  0x19   : > { %784 = vset.pattern.permute.xlu0 (!%p163_p8), %v863_v0  ;;  %783 = vset.pattern.permute.xlu1 (!%p163_p8), %v864_v1  ;;  %s866_s29 = smov (!%p163_p8), 127   ;;  %v229_v12 = vlaneseq (!%p163_p8)  ;;  %v869_v14 = vmov (!%p163_p8), 0.0   ;;  %p202_p11 = scmp.lt.s32.totalorder (!%p163_p8), %s844_s17, 2 }
  0x1a   : > { %p237_p12 = scmp.eq.s32.totalorder (!%p163_p8), %s844_s17, 0  ;;  %p240_p13 = scmp.eq.s32.totalorder (!%p163_p8), %s844_s17, 1 }
  0x1b   : > { %vm937_vm1 = vcmp.lt.s32.totalorder (!%p163_p8), %v229_v12, 256  ;;  %v960_v19 = vand.u32 (!%p163_p8), 127, %v229_v12  ;;  %s446_s13 = smul.u32 (!%p163_p8), 3, %s848_s18  ;;  %v992_v50 = vshrl.u32 (!%p163_p8), %v229_v12, 7 }
  0x1c   : > { %233 = vst.msk [vmem:[#allocation2] sm:$0x3] (!%p163_p8), %vm937_vm1, %v869_v14 }
  0x1d   : > { %v963_v20 = vadd.s32 (!%p163_p8), 128, %v960_v19  ;;  %v250_v22 = vcvt.s32.f32 (!%p163_p8), %v960_v19  ;;  %s447_s14 = sadd.s32 (!%p163_p8), %s844_s17, %s446_s13  ;;  %v1002_v59 = vsub.s32 (!%p163_p8), 0, %v992_v50  ;;  %v1007_v63 = vsub.s32 (!%p163_p8), 1, %v992_v50 }
  0x1e   : > { %s973_s15 = sshll.u32 (!%p163_p8), %s447_s14, 3 }
  0x1f   : > { %s930_s23 = scalar_select %p200_p10, %s848_s18, 1  ;;  %v251_v24 = vcvt.s32.f32 %v963_v20  ;;  %v252_v26 = vadd.f32 0.5, %v250_v22 }
  0x20   : > { %s946_s30 = scalar_select %p202_p11, %s844_s17, 2 }
  0x21   : > { %s723_s24 = sshll.u32 %s930_s23, 3  ;;  %s730_s4 = smul.u32 6, %s930_s23  ;;  %v253_v28 = vadd.f32 0.5, %v251_v24  ;;  %v255_v30 = vmul.f32 0.0625, %v252_v26 }
  0x22   : > { %s216_s27 = scalar_lea.vmem %s1140_s2, %s723_s24  ;;  %s721_s5 = sshll.u32 %s946_s30, 1 }
  0x23   : > { %v236_v2 = vld [vmem:[%s216_s27] sm:$0xff]  ;;  %s209_s6 = sadd.s32 %s730_s4, %s721_s5  ;;  %v256_v32 = vmul.f32 0.0625, %v253_v28  ;;  %v257_v33 = vfloor.f32 %v255_v30  ;;  %s980_s16 = sld [smem:[#allocation4 + %s973_s15]] }
  0x24   : > { %v321_v3 = vmul.f32 0.5, %v236_v2  ;;  %vm422_vm0 = vcmp.gt.f32.partialorder %v236_v2, 0.5  ;;  %s722_s7 = sshll.u32 %s209_s6, 3  ;;  %s457_s17 = sadd.s32 1, %s973_s15 }
  0x25   : > { %v423_v7 = vsel %vm422_vm0, 1, %v864_v1  ;;  %s211_s10 = scalar_lea.vmem %s1139_s1, %s722_s7  ;;  %v258_v37 = vfloor.f32 %v256_v32  ;;  %v259_v39 = vmul.f32 16.0, %v257_v33  ;;  %s989_s18 = sld [smem:[#allocation4 + %s457_s17]] }
  0x26   : > { %323 = vrot.lane.b32.xlu0 %v321_v3, %s865_s28  ;;  %v953_v15 = vld [vmem:[%s211_s10] sm:$0x7f]  ;;  %v955_v16 = vld [vmem:[%s211_s10 + $0x8] sm:$0x7f]  ;;  %s466_s24 = sadd.s32 2, %s973_s15  ;;  %s475_s26 = sadd.s32 3, %s973_s15 }
  0x27   : > { %v725_v17 = vmul.f32 -1.442695, %v953_v15  ;;  %v726_v18 = vmul.f32 -1.442695, %v955_v16  ;;  %v279_v21 = vmul.f32 1.442695, %v953_v15  ;;  %v261_v44 = vsub.f32 %v250_v22, %v259_v39 }
  0x28   : > { %v281_v23 = vmul.f32 1.442695, %v955_v16  ;;  %s238_s11 = scalar_select %p237_p12, 0.68, 1.03 }
  0x29   : > { %788 = vpow2.f32 %v725_v17  ;;  %s239_s12 = scalar_select %p237_p12, 1.38, 2.65  ;;  %v260_v42 = vmul.f32 16.0, %v258_v37  ;;  %v450_v58 = vstv %s980_s16 }
  0x2a   : > { %397 = vrot.lane.b32.xlu0 %v236_v2, %s866_s29  ;;  %790 = vpow2.f32 %v726_v18  ;;  %s1163_s11 = smov (%p240_p13, %s238_s11), 0.97  ;;  %s998_s25 = sld [smem:[#allocation4 + %s466_s24]]  ;;  %vm451_vm2 = vcmp.eq.s32.totalorder %v960_v19, %v450_v58  ;;  %vm452_vm3 = vcmp.eq.s32.totalorder %v963_v20, %v450_v58  ;;  %v531_v3 = vand.u32 2147483647, %v953_v15 }
  0x2b   : > { %792 = vpow2.f32 %v279_v21  ;;  %s1165_s12 = smov (%p240_p13, %s239_s12), 1.87  ;;  %v283_v35 = vstv %s1163_s11  ;;  %v262_v49 = vsub.f32 %v251_v24, %v260_v42  ;;  %s1013_s27 = sld [smem:[#allocation4 + %s475_s26]] }
  0x2c   : > { %794 = vpow2.f32 %v281_v23  ;;  %v286_v36 = vstv %s1165_s12  ;;  %s484_s28 = sadd.s32 4, %s973_s15  ;;  %s493_s29 = sadd.s32 5, %s973_s15  ;;  %v533_v18 = vsub.f32 0.0, %v531_v3 }
  0x2d   : > { %s1037_s4 = sld [smem:[#allocation4 + %s484_s28]]  ;;  %s502_s6 = sadd.s32 6, %s973_s15 }
  0x2e   : > { %s1047_s5 = sld [smem:[#allocation4 + %s493_s29]]  ;;  %s511_s8 = sadd.s32 7, %s973_s15 }
  0x2f   : > { %s1065_s7 = sld [smem:[#allocation4 + %s502_s6]]  ;;  %s731_s10 = smul.u32 3, %s930_s23 }
  0x30   : > { %v468_v23 = vstv %s998_s25  ;;  %s1075_s9 = sld [smem:[#allocation4 + %s511_s8]] }
  0x31   : > { %vm469_vm6 = vcmp.eq.s32.totalorder %v960_v19, %v468_v23  ;;  %vm470_vm7 = vcmp.eq.s32.totalorder %v963_v20, %v468_v23  ;;  %s222_s11 = sadd.s32 %s731_s10, %s946_s30 }
  0x32   : > { %s724_s12 = sshll.u32 %s222_s11, 3 }
  0x33   : > { %v789_v25 = vpop.eup %788  ;;  %s224_s15 = scalar_lea.vmem %s1141_s3, %s724_s12 }
  0x34   : > { %v791_v27 = vpop.eup %790  ;;  %v269_v29 = vadd.f32 1.0, %v789_v25 }
  0x35   : > { %v270_v31 = vadd.f32 1.0, %v791_v27  ;;  %v793_v34 = vpop.eup %792 }
  0x36   : > { %796 = vrcp.f32 %v269_v29  ;;  %v795_v38 = vpop.eup %794  ;;  %v975_v40 = vmul.f32 %v793_v34, %v283_v35  ;;  %v977_v41 = vmul.f32 %v793_v34, %v286_v36  ;;  %v477_v34 = vstv %s1013_s27 }
  0x37   : > { %798 = vrcp.f32 %v270_v31  ;;  %v982_v43 = vmul.f32 %v795_v38, %v283_v35  ;;  %v986_v46 = vmul.f32 %v795_v38, %v286_v36  ;;  %v535_v35 = vmul.f32 1.442695, %v533_v18 }
  0x38   : > { %v297_v45 = vmul.f32 0.5, %v975_v40  ;;  %v309_v48 = vmul.f32 0.5, %v977_v41  ;;  %v291_v31 = vrot.slane %v977_v41, 1  ;;  %vm478_vm8 = vcmp.eq.s32.totalorder %v960_v19, %v477_v34 }
  0x39   : > { %v298_v51 = vmul.f32 0.5, %v982_v43  ;;  %v310_v55 = vmul.f32 0.5, %v986_v46  ;;  %v292_v42 = vrot.slane %v986_v46, 1  ;;  %vm479_vm9 = vcmp.eq.s32.totalorder %v963_v20, %v477_v34 }
  0x3a   : > { %v301_v54 = vrot.slane %v297_v45, 2  ;;  %v313_v57 = vrot.slane %v309_v48, 2  ;;  %800 = vpow2.f32 %v535_v35 }
  0x3b   : > { %v302_v61 = vrot.slane %v298_v51, 2  ;;  %v314_v1 = vrot.slane %v310_v55, 2  ;;  %v472_v51 = vsel %vm470_vm7, 1.0, %v869_v14 }
  0x40   : > { %v797_v47 = vpop.eup %796 }
  0x41   : > { %v799_v52 = vpop.eup %798  ;;  %v275_v53 = vadd.f32 %v797_v47, %v261_v44  ;;  %v277_v56 = vadd.f32 %v797_v47, %v257_v33 }
  0x42   : > { %v276_v60 = vadd.f32 %v799_v52, %v262_v49  ;;  %v471_v49 = vsel %vm469_vm6, 1.0, %v869_v14 }
  0x43   : > { %v1004_v62 = vadd.f32 %v301_v54, %v275_v53  ;;  %v305_v21 = vsub.f32 %v275_v53, %v301_v54  ;;  %v317_v26 = vsub.f32 %v277_v56, %v313_v57  ;;  %v295_v53 = vmul.f32 %v291_v31, %v975_v40 }
  0x44   : > { %v306_v22 = vsub.f32 %v276_v60, %v302_v61 }
  0x45   : > { %v377_v41 = vrot.slane %v317_v26, %v1007_v63 }
  0x46   : > { %v350_v38 = vrot.slane %v306_v22, %v1002_v59  ;;  %v870_v22 = vmov 1966171168  }
  0x47   : > { %v553_v23 = vunpack.c.l.s4 %v870_v22 }
  0x98   : > { %v324_v4 = vpop.permute.xlu0 %323 }
  0x99   : > { %v326_v5 = vadd.f32 %v324_v4, %v236_v2  ;;  %v342_v6 = vsub.f32 %v236_v2, %v324_v4  ;;  %v459_v4 = vstv %s989_s18 }
  0x9a   : > { %vm1026_vm4 = vcmp.eq.s32.totalorder %v960_v19, %v459_v4  ;;  %vm1031_vm5 = vcmp.eq.s32.totalorder %v963_v20, %v459_v4 }
  0x9b   : > { %369 = vperm.xlu0 %784, %v326_v5   ;;  %337 = vperm.xlu1 %783, %v326_v5   ;;  %v532_v5 = vand.u32 2147483647, %v955_v16  ;;  %v462_v32 = vsel %vm1026_vm4, 1.0, %v869_v14  ;;  %v463_v33 = vsel %vm1031_vm5, 1.0, %v869_v14 }
  0x9c   : > { %v398_v9 = vpop.permute.xlu0 %397 }
  0x9d   : > { %v400_v10 = vmul.f32 %v398_v9, %v236_v2  ;;  %v1009_v2 = vadd.f32 %v313_v57, %v277_v56  ;;  %v453_v9 = vsel %vm451_vm2, 1.0, %v869_v14  ;;  %v534_v24 = vsub.f32 0.0, %v532_v5 }
  0x9e   : > { %v455_v27 = vmax.f32 %v453_v9, 0.0  ;;  %v486_v56 = vstv %s1037_s4  ;;  %v296_v57 = vmul.f32 %v292_v42, %v982_v43 }
  0x9f   : > { %353 = vperm.xlu1 %783, %v342_v6   ;;  %787 = vset.pattern.permute.xlu0 %v867_v8  ;;  %v537_v39 = vmul.f32 1.442695, %v534_v24  ;;  %vm487_vm10 = vcmp.eq.s32.totalorder %v960_v19, %v486_v56  ;;  %vm488_vm11 = vcmp.eq.s32.totalorder %v963_v20, %v486_v56  ;;  %v504_v24 = vstv %s1065_s7 }
  0xa0   : > { %425 = vperm.xlu0 %787, %v423_v7   ;;  %v330_v7 = vrot.slane %v1004_v62, %v1002_v59  ;;  %v464_v44 = vmax.f32 %v455_v27, %v462_v32  ;;  %vm505_vm14 = vcmp.eq.s32.totalorder %v960_v19, %v504_v24  ;;  %vm506_vm15 = vcmp.eq.s32.totalorder %v963_v20, %v504_v24 }
  0xa1   : > { %802 = vpow2.f32 %v537_v39 }
  0xa2   : > { %v473_v58 = vmax.f32 %v464_v44, %v471_v49 }
  0xa3   : > { %785 = vset.pattern.permute.xlu1 %v863_v0  ;;  %v278_v0 = vadd.f32 %v799_v52, %v258_v37  ;;  %v346_v37 = vrot.slane %v305_v21, %v1002_v59  ;;  %v403_v52 = vsub.s32 2, %v992_v50  ;;  %v490_v21 = vsel %vm488_vm11, 1.0, %v869_v14 }
  0xa4   : > { %383 = vperm.xlu1 %785, %v342_v6   ;;  %v308_v6 = vadd.f32 %v302_v61, %v276_v60  ;;  %v480_v61 = vsel %vm478_vm8, 1.0, %v869_v14  ;;  %vm588_vm8 = vcmask 1040384  }
  0xa5   : > { %v320_v8 = vadd.f32 %v314_v1, %v278_v0  ;;  %v318_v30 = vsub.f32 %v278_v0, %v314_v1  ;;  %v481_v0 = vsel %vm479_vm9, 1.0, %v869_v14  ;;  %v495_v1 = vstv %s1047_s5 }
  0xa6   : > { %v334_v25 = vrot.slane %v308_v6, %v1002_v59  ;;  %v404_v9 = vrot.slane %v295_v53, %v403_v52  ;;  %vm1080_vm12 = vcmp.eq.s32.totalorder %v960_v19, %v495_v1  ;;  %vm1085_vm13 = vcmp.eq.s32.totalorder %v963_v20, %v495_v1 }
  0xa7   : > { %v367_v36 = vrot.slane %v320_v8, %v1007_v63  ;;  %v381_v48 = vrot.slane %v318_v30, %v1007_v63  ;;  %v801_v30 = vpop.eup %800  ;;  %v499_v39 = vsel %vm1085_vm13, 1.0, %v869_v14  ;;  %vm604_vm9 = vcmp.eq.s32.totalorder %v960_v19, 0 }
  0xa8   : > { %786 = vset.pattern.permute.xlu1 %v868_v11  ;;  %v363_v11 = vrot.slane %v1009_v2, %v1007_v63 }
  0xa9   : > { %411 = vperm.xlu1 %786, %v400_v10   ;;  %v454_v10 = vsel %vm452_vm3, 1.0, %v869_v14 }
  0xaa   : > { %v456_v28 = vmax.f32 %v454_v10, 0.0  ;;  %v482_v10 = vmax.f32 %v473_v58, %v480_v61 }
  0xab   : > { %v803_v35 = vpop.eup %802 }
  0xac   : > { %v465_v45 = vmax.f32 %v456_v28, %v463_v33 }
  0xae   : > { %v474_v60 = vmax.f32 %v465_v45, %v472_v51  ;;  %v540_v51 = vadd.f32 1.0, %v803_v35 }
  0xb0   : > { %v483_v12 = vmax.f32 %v474_v60, %v481_v0 }
  0xb2   : > { %v492_v34 = vmax.f32 %v483_v12, %v490_v21 }
  0xb4   : > { %v501_v49 = vmax.f32 %v492_v34, %v499_v39  ;;  %v524_v39 = vld [vmem:[#allocation2] sm:$0x3] }
 0x11a   : > { %v338_v29 = vpop.permute.xlu1 %337  ;;  %v370_v46 = vpop.permute.xlu0 %369 }
 0x11b   : > { %v340_v62 = vmin.f32 %v330_v7, %v338_v29  ;;  %v341_v40 = vmin.f32 %v334_v25, %v338_v29  ;;  %v372_v2 = vmin.f32 %v363_v11, %v370_v46  ;;  %v373_v3 = vmin.f32 %v367_v36, %v370_v46 }
 0x11c   : > { %v408_v7 = vrot.slane %v296_v57, %v403_v52  ;;  %v489_v11 = vsel %vm487_vm10, 1.0, %v869_v14  ;;  %v507_v52 = vsel %vm505_vm14, 1.0, %v869_v14 }
 0x11d   : > { %v491_v33 = vmax.f32 %v482_v10, %v489_v11 }
 0x11e   : > { %v354_v47 = vpop.permute.xlu1 %353 }
 0x11f   : > { %v356_v54 = vmax.f32 %v346_v37, %v354_v47  ;;  %v357_v55 = vmax.f32 %v350_v38, %v354_v47  ;;  %v498_v38 = vsel %vm1080_vm12, 1.0, %v869_v14  ;;  %v426_v42 = vpop.permute.xlu0 %425  ;;  %v539_v47 = vadd.f32 1.0, %v801_v30 }
 0x120   : > { %vm427_vm0 = vcmp.eq.s32.totalorder %v426_v42, 1  ;;  %v554_v30 = vunpack.c.0.s8 %v553_v23 }
 0x121   : > { %v358_v43 = vsub.f32 %v340_v62, %v356_v54  ;;  %v359_v5 = vsub.f32 %v341_v40, %v357_v55  ;;  %v508_v54 = vsel %vm506_vm15, 1.0, %v869_v14  ;;  %804 = vlog2.f32 %v539_v47 }
 0x122   : > { %806 = vlog2.f32 %v540_v51  ;;  %v510_v56 = vmax.f32 %v501_v49, %v508_v54  ;;  %v557_v35 = vsub.s32 %v554_v30, %v992_v50 }
 0x123   : > { %v384_v4 = vpop.permute.xlu1 %383  ;;  %v390_v25 = vmax.f32 %v358_v43, 0.0  ;;  %v391_v26 = vmax.f32 %v359_v5, 0.0  ;;  %v525_v5 = vmax.f32 %v953_v15, 0.0 }
 0x124   : > { %v386_v6 = vmax.f32 %v377_v41, %v384_v4  ;;  %v387_v8 = vmax.f32 %v381_v48, %v384_v4  ;;  %v513_v41 = vstv %s1075_s9  ;;  %v500_v48 = vmax.f32 %v491_v33, %v498_v38 }
 0x125   : > { %vm514_vm2 = vcmp.eq.s32.totalorder %v960_v19, %v513_v41  ;;  %vm515_vm3 = vcmp.eq.s32.totalorder %v963_v20, %v513_v41 }
 0x126   : > { %v388_v17 = vsub.f32 %v372_v2, %v386_v6  ;;  %v389_v18 = vsub.f32 %v373_v3, %v387_v8  ;;  %v509_v55 = vmax.f32 %v500_v48, %v507_v52  ;;  %v516_v57 = vsel %vm514_vm2, 1.0, %v869_v14 }
 0x127   : > { %v517_v60 = vsel %vm515_vm3, 1.0, %v869_v14 }
 0x128   : > { %v392_v27 = vmax.f32 %v388_v17, 0.0  ;;  %v393_v28 = vmax.f32 %v389_v18, 0.0  ;;  %v412_v29 = vpop.permute.xlu1 %411  ;;  %v518_v0 = vmax.f32 %v509_v55, %v516_v57  ;;  %v519_v1 = vmax.f32 %v510_v56, %v517_v60 }
 0x129   : > { %v414_v31 = vadd.f32 %v412_v29, %v404_v9  ;;  %v415_v32 = vadd.f32 %v412_v29, %v408_v7  ;;  %v526_v7 = vmax.f32 %v955_v16, 0.0 }
 0x12a   : > { %v394_v36 = vmul.f32 %v392_v27, %v390_v25  ;;  %v395_v37 = vmul.f32 %v393_v28, %v391_v26  ;;  %v527_v6 = vmul.f32 %v518_v0, %v953_v15  ;;  %v528_v10 = vmul.f32 %v519_v1, %v955_v16 }
 0x12b   : > { %v805_v8 = vpop.eup %804 }
 0x12c   : > { %v416_v44 = vsub.f32 %v414_v31, %v394_v36  ;;  %v417_v45 = vsub.f32 %v415_v32, %v395_v37  ;;  %v529_v11 = vsub.f32 %v525_v5, %v527_v6  ;;  %v542_v21 = vmul.f32 0.6931472, %v805_v8 }
 0x12d   : > { %v530_v25 = vsub.f32 %v526_v7, %v528_v10 }
 0x12e   : > { %v418_v53 = vmul.f32 0.5, %v416_v44  ;;  %v419_v46 = vmul.f32 0.5, %v417_v45  ;;  %v545_v29 = vadd.f32 %v542_v21, %v529_v11 }
 0x130   : > { %vm420_vm4 = vcmp.gt.f32.partialorder %v394_v36, %v418_v53  ;;  %vm421_vm5 = vcmp.gt.f32.partialorder %v395_v37, %v419_v46 }
 0x131   : > { %vm428_vm6 = vmand %vm420_vm4, %vm427_vm0 }
 0x132   : > { %vm429_vm7 = vmand %vm421_vm5, %vm427_vm0  ;;  %v430_v58 = vsel %vm428_vm6, 1.0, %v869_v14 }
 0x133   : > { %v431_v61 = vsel %vm429_vm7, 1.0, %v869_v14  ;;  %v432_v62 = vrot.slane %v430_v58, 4  ;;  %v807_v14 = vpop.eup %806 }
 0x134   : > { %v438_v40 = vrot.slane %v431_v61, 4  ;;  %v544_v26 = vmul.f32 0.6931472, %v807_v14 }
 0x135   : > { %v433_v20 = vmax.f32 %v430_v58, %v432_v62 }
 0x136   : > { %v439_v2 = vmax.f32 %v431_v61, %v438_v40  ;;  %v546_v32 = vadd.f32 %v544_v26, %v530_v25 }
 0x137   : > { %v434_v3 = vrot.slane %v433_v20, 2 }
 0x138   : > { %v440_v4 = vrot.slane %v439_v2, 2 }
 0x139   : > { %v435_v43 = vmax.f32 %v433_v20, %v434_v3 }
 0x13a   : > { %v441_v9 = vmax.f32 %v439_v2, %v440_v4 }
 0x13b   : > { %v436_v12 = vrot.slane %v435_v43, 1 }
 0x13c   : > { %v442_v17 = vrot.slane %v441_v9, 1 }
 0x13d   : > { %v437_v18 = vmax.f32 %v435_v43, %v436_v12 }
 0x13e   : > { %v443_v24 = vmax.f32 %v441_v9, %v442_v17 }
 0x13f   : > { %v444_v27 = vmax.f32 %v437_v18, 0.0 }
 0x140   : > { %v445_v28 = vmax.f32 %v443_v24, 0.0 }
 0x141   : > { %v520_v15 = vsub.f32 1.0, %v444_v27 }
 0x142   : > { %v521_v31 = vsub.f32 1.0, %v445_v28 }
 0x143   : > { %v522_v33 = vmax.f32 %v520_v15, %v518_v0 }
 0x144   : > { %v523_v16 = vmax.f32 %v521_v31, %v519_v1 }
 0x145   : > { %v547_v34 = vmul.f32 %v545_v29, %v522_v33 }
 0x146   : > { %v548_v36 = vmul.f32 %v546_v32, %v523_v16 }
 0x148   : > { %v551_v37 = vcombine.high %v547_v34, %v548_v36 }
 0x14a   : > { %v558_v38 = vrot.slane %v551_v37, %v557_v35 }
 0x14c   : > { %v565_v41 = vrot.slane %v558_v38, %v557_v35 }
 0x14e   : > { %v567_v42 = vadd.f32 %v565_v41, %v524_v39 }
 0x150   : > { %572 = vst.msk [vmem:[#allocation2] sm:$0x3] %vm937_vm1, %v567_v42  ;;  %vm603_vm1 = vcmp.eq.s32.totalorder %v992_v50, 0 }
 0x151   : > { %vm605_vm10 = vmand %vm603_vm1, %vm604_vm9 }
 0x157   : > { %v576_v44 = vld [vmem:[#allocation2] sm:$0x3] }
 0x158   : > { %v581_v45 = vrot.slane %v576_v44, %v1002_v59  ;;  %v585_v47 = vrot.slane %v576_v44, %v1007_v63 }
 0x15a   : > { %v589_v48 = vsel %vm588_vm8, %v581_v45, 0.0  ;;  %v590_v49 = vsel %vm588_vm8, %v585_v47, 0.0 }
 0x15b   : > { %v591_v51 = vadd.f32 %v590_v49, %v589_v48 }
 0x15d   : > { %592 = vadd.xlane.f32.xlu1 %v591_v51 }
 0x1ea   : > { %v593_v52 = vpop.xlane.xlu1 %592 }
 0x1eb   : > { %v594_v53 = vrot.slane %v593_v52, 4 }
 0x1ed   : > { %v595_v46 = vadd.f32 %v594_v53, %v593_v52 }
 0x1ef   : > { %v596_v54 = vrot.slane %v595_v46, 2 }
 0x1f1   : > { %v597_v55 = vadd.f32 %v596_v54, %v595_v46 }
 0x1f3   : > { %v598_v56 = vrot.slane %v597_v55, 1 }
 0x1f5   : > { %v599_v13 = vadd.f32 %v598_v56, %v597_v55 }
 0x1f7   : > { %732 = vpush %v599_v13 }
 0x228   : > { %s733_s16 = spop %732 }
 0x229   : > { %v606_v59 = vstv %s733_s16 }
 0x22a   : > { %v607_v63 = vsel %vm605_vm10, %v606_v59, 0.0 }
 0x22b   : > { %608 = vst [vmem:[%s224_s15] sm:$0xff] %v607_v63 }
 0x22c PF: > { %s19_s20 = sadd.s32 1, %s860_s20   ;;  %s1152_s17 = smov %s852_s19 }
 0x22d   : > { %p16_p0 = scmp.ge.s32.totalorder %s19_s20, 8   ;;  %s1153_s18 = smov %s856_s0 }
 0x22e   : > { %s1154_s19 = smov %s1157_s21  ;;  %s1155_s0 = smov %s1161_s22 }
 0x22f   :  { %18 = sbr.rel (!%p16_p0) target bundleno = 18 (0x12), region = 69 }

</bundles_post_ra>
